<compile_context>
chip_gen: v7x
topology: tpu7x:2x2x1
jax: 0.10.0
libtpu: 0.0.40
codegen_flags: <defaults>
</compile_context>

<pallas_src>
import functools

import jax
import jax.numpy as jnp
from jax.experimental import pallas as pl
from jax.experimental.pallas import tpu as pltpu


def _rmsnorm_kernel(x_ref, w_ref, o_ref, *, eps: float):
    # Upcast to f32, mean of squares along the lane axis, rsqrt, scale.
    x = x_ref[...].astype(jnp.float32)                  # (tile_rows, d_model)
    var = jnp.mean(x * x, axis=-1, keepdims=True)       # (tile_rows, 1)
    inv = jax.lax.rsqrt(var + eps)
    w = w_ref[...].astype(jnp.float32)                  # (1, d_model) broadcasts
    o_ref[...] = (w * x * inv).astype(o_ref.dtype)


def _sublane_multiple(dtype) -> int:
    """Sublane packing multiple: 8 for 32-bit, 16 for 16-bit, 32 for 8-bit."""
    itemsize = jnp.dtype(dtype).itemsize
    return max(8, 32 // max(1, itemsize))


def _choose_row_tile(rows: int, row_bytes: int, sublane: int) -> int:
    """Pick a row tile targeting ~4 MiB per input block, >=4 even grid steps."""
    TARGET_BLOCK_BYTES = 4 << 20   # ~4 MiB per buffer per step (roofline is flat past this)
    MIN_BLOCK_BYTES = 1 << 20      # don't split below ~1 MiB per step (per-step overhead)

    # Upper bound from the byte target, rounded to the sublane multiple.
    tile = TARGET_BLOCK_BYTES // max(1, row_bytes)
    tile = max(sublane, (tile // sublane) * sublane)
    tile = min(tile, rows)

    if tile >= rows:
        # Whole input fits in a single target-sized block.  Still split into
        # >= 4 (else 2) steps if each step moves >= MIN_BLOCK_BYTES, so the
        # DMA/compute pipeline gets primed and v7x can use both TensorCores.
        split = (rows // 4 // sublane) * sublane
        if split >= sublane and split * row_bytes >= MIN_BLOCK_BYTES:
            tile = split
        else:
            split = (rows // 2 // sublane) * sublane
            if split >= sublane and split * row_bytes >= MIN_BLOCK_BYTES:
                tile = split
            else:
                return rows   # tiny input: single full-extent block

    # Prefer an even step count (v7x dual-TC balance); shrink the tile by
    # whole sublane groups until cdiv(rows, tile) is even (bounded search).
    steps = -(-rows // tile)
    if steps % 2 == 1:
        t = tile
        for _ in range(8):
            t -= sublane
            if t < sublane or t * row_bytes < MIN_BLOCK_BYTES:
                break
            if (-(-rows // t)) % 2 == 0:
                tile = t
                break
    return tile


def rmsnorm(x: jax.Array, weight: jax.Array, eps: float = 1e-5,
            row_tile: int | None = None) -> jax.Array:
    """RMSNorm matching the PyTorch module's forward semantics.

    x:      (batch, seq_len, d_model) (any leading dims), any float dtype
    weight: (d_model,)
    returns same shape/dtype as x.
    """
    orig_shape = x.shape
    orig_dtype = x.dtype
    d_model = orig_shape[-1]
    rows = 1
    for s in orig_shape[:-1]:
        rows *= s

    x2d = x.reshape(rows, d_model)
    w2d = weight.reshape(1, d_model)

    in_bytes = jnp.dtype(x.dtype).itemsize
    out_bytes = in_bytes  # output dtype == input dtype
    sublane = _sublane_multiple(x.dtype)
    row_bytes = d_model * in_bytes

    # --- Tile selection: fixed block-byte target, >= 4 even grid steps ----
    if row_tile is None:
        tile = _choose_row_tile(rows, row_bytes, sublane)
    else:
        tile = min(int(row_tile), rows)
        if tile < rows:
            tile = max(sublane, (tile // sublane) * sublane)

    grid = (pl.cdiv(rows, tile),)

    # --- Scoped VMEM limit sized to the chosen (small) tiles + headroom ---
    block_in = tile * d_model * in_bytes
    block_out = tile * d_model * out_bytes
    f32_block = tile * d_model * 4
    weight_bytes = 2 * d_model * jnp.dtype(weight.dtype).itemsize
    vmem_limit = 2 * block_in + 2 * block_out + 2 * f32_block + weight_bytes + (16 << 20)
    vmem_limit = int(min(max(vmem_limit, 24 << 20), 56 << 20))  # stays under v7x 64 MiB/TC

    # NOTE: for real transformer widths d_model is a multiple of 128, keeping
    # output stores lane-dense (unmasked vst).  Tiny d_model (like the smoke
    # test below) falls under the "block == full dim" exception.
    out = pl.pallas_call(
        functools.partial(_rmsnorm_kernel, eps=eps),
        out_shape=jax.ShapeDtypeStruct((rows, d_model), orig_dtype),
        grid_spec=pltpu.PrefetchScalarGridSpec(
            num_scalar_prefetch=0,
            grid=grid,
            in_specs=[
                pl.BlockSpec((tile, d_model), lambda i: (i, 0)),   # x rows
                pl.BlockSpec((1, d_model), lambda i: (0, 0)),      # weight (shared)
            ],
            out_specs=pl.BlockSpec((tile, d_model), lambda i: (i, 0)),
        ),
        compiler_params=pltpu.CompilerParams(
            dimension_semantics=("parallel",),
            vmem_limit_bytes=vmem_limit,
        ),
    )(x2d, w2d)

    return out.reshape(orig_shape)


def rmsnorm_ref(x, weight, eps=1e-5):
    xf = x.astype(jnp.float32)
    var = jnp.mean(xf * xf, axis=-1, keepdims=True)
    xn = xf * jax.lax.rsqrt(var + eps)
    return (weight.astype(jnp.float32) * xn).astype(x.dtype)


if __name__ == "__main__":
    key = jax.random.PRNGKey(0)
    batch, seq, d_model = 2, 8, 32

    x = jax.random.normal(key, (batch, seq, d_model), dtype=jnp.float32)
    # Deterministic parameter init: nn.Parameter(torch.ones(d_model))
    weight = jnp.ones((d_model,), dtype=jnp.float32)

    out = rmsnorm(x, weight, eps=1e-5)
    out = jax.block_until_ready(out)

    ref = rmsnorm_ref(x, weight, eps=1e-5)
    assert out.shape == x.shape and out.dtype == x.dtype
    assert jnp.allclose(out, ref, atol=1e-5, rtol=1e-5), "mismatch vs reference"

    print("KERNEL_OK")
</pallas_src>

<mosaic_0001>
module attributes {stable_mosaic.version = 11 : i64} {
  func.func @_rmsnorm_kernel(%arg0: i32, %arg1: memref<16x32xf32, #tpu.memory_space<vmem>>, %arg2: memref<1x32xf32, #tpu.memory_space<vmem>>, %arg3: memref<16x32xf32, #tpu.memory_space<vmem>>) attributes {dimension_semantics = [#tpu.dimension_semantics<parallel>], iteration_bounds = array<i64: 1>, scalar_prefetch = 0 : i64, scratch_operands = 0 : i64, tpu.core_type = #tpu.core_type<tc>, window_params = [{transform_indices = @transform_0, window_bounds = array<i64: 16, 32>}, {pipeline_mode = #tpu.pipeline_mode<synchronous>, transform_indices = @transform_1, window_bounds = array<i64: 1, 32>}, {transform_indices = @transform_2, window_bounds = array<i64: 16, 32>}]} {
    %c0 = arith.constant 0 : index
    %c0_0 = arith.constant 0 : index
    %0 = vector.load %arg1[%c0, %c0_0] : memref<16x32xf32, #tpu.memory_space<vmem>>, vector<16x32xf32>
    %1 = arith.mulf %0, %0 : vector<16x32xf32>
    %cst = arith.constant dense<0.000000e+00> : vector<16xf32>
    %2 = vector.multi_reduction <add>, %1, %cst [1] : vector<16x32xf32> to vector<16xf32>
    %3 = vector.shape_cast %2 : vector<16xf32> to vector<16x1xf32>
    %cst_1 = arith.constant 3.200000e+01 : f32
    %4 = vector.broadcast %cst_1 : f32 to vector<16x1xf32>
    %5 = arith.divf %3, %4 : vector<16x1xf32>
    %cst_2 = arith.constant 9.99999974E-6 : f32
    %6 = vector.broadcast %cst_2 : f32 to vector<16x1xf32>
    %7 = arith.addf %5, %6 : vector<16x1xf32>
    %8 = math.rsqrt %7 : vector<16x1xf32>
    %c0_3 = arith.constant 0 : index
    %c0_4 = arith.constant 0 : index
    %9 = vector.load %arg2[%c0_3, %c0_4] : memref<1x32xf32, #tpu.memory_space<vmem>>, vector<1x32xf32>
    %10 = vector.broadcast %9 : vector<1x32xf32> to vector<16x32xf32>
    %11 = arith.mulf %10, %0 : vector<16x32xf32>
    %12 = vector.broadcast %8 : vector<16x1xf32> to vector<16x32xf32>
    %13 = arith.mulf %11, %12 : vector<16x32xf32>
    %c0_5 = arith.constant 0 : index
    %c0_6 = arith.constant 0 : index
    %14 = vector.load %arg3[%c0_5, %c0_6] : memref<16x32xf32, #tpu.memory_space<vmem>>, vector<16x32xf32>
    tpu.vector_store %arg3[%c0_5, %c0_6], %13 {strides = array<i32>} : memref<16x32xf32, #tpu.memory_space<vmem>>, vector<16x32xf32>,
    return
  }
  func.func @transform_0(%arg0: i32) -> (i32, i32) {
    %c0_i32 = arith.constant 0 : i32
    %c0_i32_0 = arith.constant 0 : i32
    return %arg0, %c0_i32 : i32, i32
  }
  func.func @transform_1(%arg0: i32) -> (i32, i32) {
    %c0_i32 = arith.constant 0 : i32
    %c0_i32_0 = arith.constant 0 : i32
    %c0_i32_1 = arith.constant 0 : i32
    return %c0_i32, %c0_i32_0 : i32, i32
  }
  func.func @transform_2(%arg0: i32) -> (i32, i32) {
    %c0_i32 = arith.constant 0 : i32
    %c0_i32_0 = arith.constant 0 : i32
    return %arg0, %c0_i32 : i32, i32
  }
}

</mosaic_0001>

<bundles_post_ra>
// kernel: tpu_custom_call.1
= control target key start
LH: loop header
LB: loop body
LE: loop exit
PB: predicated region body
PF: predicated region fallthrough
CT: control target
= control target key end

     0   :  { %7 = vsyncpa [#allocation3], 0  ;;  %s187_s0 = inlined_call_operand.hbm [shape: f32[16,32], index: 0, kind: input, shape index: {}]   ;;  %s188_s1 = inlined_call_operand.vmem [shape: f32[1,32], index: 1, kind: input, shape index: {}]   ;;  %s189_s2 = inlined_call_operand.hbm [shape: f32[16,32], index: 2, kind: output, shape index: {}]  }
   0x1   :  { %8 = vsyncpa [#allocation4], 0  ;;  %s131_s9 = smov [#allocation2]   ;;  %s83_s13 = scalar_lea.hbm %s187_s0, 256 }
   0x2   :  { %s14_s10 = sshll.u32 %s131_s9, 4  ;;  %p84_p0 = scmp.ne.s32.totalorder %s187_s0, %s83_s13  ;;  %s15_s10 = int_to_ptr.vmem [resolvable:$true] %s14_s10 }
   0x3   :  { %p87_p1 = scmp.lt.u32.totalorder %s83_s13, %s187_s0 }
   0x5   :  { %p89_p2 = pnand %p87_p1, %p84_p0 }
   0x7   :  { %92 = shalt.err (!%p89_p2)
}
   0x8   :  { %s93_s18 = scalar_lea.vmem %s15_s10, 256  ;;  %p98_p4 = scmp.lt.s32.totalorder %s15_s10, %s15_s10 }
   0x9   :  { %p94_p3 = scmp.ne.s32.totalorder %s15_s10, %s93_s18  ;;  %p99_p5 = scmp.lt.s32.totalorder %s93_s18, %s93_s18 }
   0xb   :  { %p100_p6 = por %p99_p5, %p98_p4 }
   0xd   :  { %p101_p7 = pnand %p100_p6, %p94_p3 }
   0xf   :  { %104 = shalt.err (!%p101_p7)
}
  0x10   :  { %s132_s19 = smov 128   ;;  %s133_s20 = smov 8  }
  0x11   :  { %20 = dma.hbm_to_vmem [thread:$0]  %s187_s0, 256, %s15_s10, [#allocation3], %s132_s19, %s132_s19, %s133_s20  }
  0x12   :  { %127 = dma.done.wait [#allocation3], 256  }
  0x13   :  { %128 = vsyncadd [#allocation3], 4294967040  ;;  %v26_v0 = vld [vmem:[#allocation2] sm:$0xff]  ;;  %vm30_vm0 = vcmask 261120   ;;  %v27_v1 = vld [vmem:[#allocation2 + $0x8] sm:$0xff]  ;;  %s134_s24 = smov [#allocation5]  }
  0x14   :  { %v28_v2 = vmul.f32 %v26_v0, %v26_v0  ;;  %v29_v3 = vmul.f32 %v27_v1, %v27_v1  ;;  %v74_v12 = vld [vmem:[%s188_s1] ss:$0 sm:$0xff]  ;;  %s62_s25 = sshll.u32 %s134_s24, 4  ;;  %s63_s25 = int_to_ptr.vmem [resolvable:$true] %s62_s25 }
  0x15   :  { %v51_v13 = vmul.f32 %v74_v12, %v26_v0  ;;  %v52_v15 = vmul.f32 %v74_v12, %v27_v1  ;;  %s105_s26 = scalar_lea.vmem %s63_s25, 256  ;;  %p110_p9 = scmp.lt.s32.totalorder %s63_s25, %s63_s25 }
  0x16   :  { %v31_v4 = vsel %vm30_vm0, %v28_v2, 0.0  ;;  %v34_v5 = vsel %vm30_vm0, %v29_v3, 0.0  ;;  %p106_p8 = scmp.ne.s32.totalorder %s63_s25, %s105_s26  ;;  %p111_p10 = scmp.lt.s32.totalorder %s105_s26, %s105_s26 }
  0x17   :  { %32 = vadd.xlane.f32.xlu0 %v31_v4 }
  0x18   :  { %p112_p11 = por %p111_p10, %p110_p9 }
  0x1a   :  { %p113_p12 = pnand %p112_p11, %p106_p8 }
  0x1b   :  { %35 = vadd.xlane.f32.xlu0 %v34_v5 }
  0xa4   :  { %v33_v6 = vpop.xlane.xlu0 %32 }
  0xa5   :  { %v38_v7 = vmul.f32 0.03125, %v33_v6 }
  0xa7   :  { %v40_v8 = vadd.f32 1e-05, %v38_v7 }
  0xa8   :  { %v36_v9 = vpop.xlane.xlu0 %35 }
  0xa9   :  { %79 = vrsqrt.f32 %v40_v8  ;;  %v39_v10 = vmul.f32 0.03125, %v36_v9 }
  0xab   :  { %v41_v11 = vadd.f32 1e-05, %v39_v10 }
  0xad   :  { %81 = vrsqrt.f32 %v41_v11 }
  0xb3   :  { %v80_v14 = vpop.eup %79 }
  0xb4   :  { %v53_v16 = vmul.f32 %v80_v14, %v51_v13 }
  0xb6   :  { %55 = vst.msk [vmem:[#allocation5] sm:$0xff] %vm30_vm0, %v53_v16 }
  0xb7   :  { %v82_v17 = vpop.eup %81 }
  0xb8   :  { %v54_v18 = vmul.f32 %v82_v17, %v52_v15 }
  0xba   :  { %56 = vst.msk [vmem:[#allocation5 + $0x8] sm:$0xff] %vm30_vm0, %v54_v18 }
  0xbb   :  { %116 = shalt.err (!%p113_p12)
}
  0xbc   :  { %s117_s28 = scalar_lea.hbm %s189_s2, 256 }
  0xbd   :  { %p118_p13 = scmp.ne.s32.totalorder %s189_s2, %s117_s28  ;;  %p121_p0 = scmp.lt.u32.totalorder %s117_s28, %s189_s2 }
  0xbf   :  { %p123_p1 = pnand %p121_p0, %p118_p13 }
  0xc1   :  { %126 = shalt.err (!%p123_p1)
}
  0xc2   :  { %68 = dma.vmem_to_hbm [thread:$0]  %s63_s25, 256, %s189_s2, [#allocation4], %s132_s19, %s132_s19, %s133_s20  }
  0xc3   :  { %129 = dma.done.wait [#allocation4], 256  }
  0xc4   :  { %130 = vsyncadd [#allocation4], 4294967040 }
  0xc5   :  { %72 = vsyncpa [#allocation3], 1 }
  0xc6   :  { %73 = vsyncpa [#allocation4], 1 }

</bundles_post_ra>
